<compile_context>
chip_gen: v5e
topology: v5e:2x2
jax: 0.10.0
libtpu: 0.0.40
codegen_flags: <defaults>
</compile_context>

<pallas_src>
import functools

import jax
import jax.numpy as jnp
from jax.experimental import pallas as pl
from jax.experimental.pallas import tpu as pltpu

ALPHA = 0.1
INPUT_SIZE = 2
HIDDEN = 10


def _lyapunov_kernel(scal_ref, x_ref, w1_ref, b1_ref, w2_ref, b2_ref,
                     w3_ref, b3_ref, out_ref):
    """One batch tile, transposed layout (features on sublanes, batch on lanes).

    scal_ref: SMEM f32[1] = [alpha * ||x||_F]
    x_ref   : (2, TB)   w1_ref: (16, 2)   b1_ref: (16, 1)
    w2_ref  : (16, 16)  b2_ref: (16, 1)   w3_ref: (8, 16)  b3_ref: (8, 1)
    out_ref : (1, TB)
    b3 already has phi(0) folded in, so the epilogue is just square + add.
    """
    hp = jax.lax.Precision.HIGHEST
    anorm = scal_ref[0]

    xt = x_ref[...]                                                       # (2, TB)
    h1 = jnp.tanh(jnp.dot(w1_ref[...], xt, precision=hp,
                          preferred_element_type=jnp.float32) + b1_ref[...])   # (16, TB)
    h2 = jnp.tanh(jnp.dot(w2_ref[...], h1, precision=hp,
                          preferred_element_type=jnp.float32) + b2_ref[...])   # (16, TB)
    phi = jnp.dot(w3_ref[...], h2, precision=hp,
                  preferred_element_type=jnp.float32) + b3_ref[...]            # (8, TB)
    out_ref[...] = jnp.square(phi[0:1, :]) + anorm                       # (1, TB)


def _rup(n, m):
    return ((n + m - 1) // m) * m


def _choose_tb(batch, tile_b):
    """Pick the batch tile: big (overhead-bound kernel) but >=2 grid steps when the
    batch spans >=2 lane tiles, so v7x's two TensorCores both get work."""
    b128 = _rup(batch, 128)
    if b128 <= 128:
        return 128
    cap = _rup(max(int(tile_b), 128), 128)
    half = _rup((b128 + 1) // 2, 128)
    return max(128, min(cap, half))


@functools.partial(jax.jit, static_argnames=("alpha", "tile_b"))
def lyapunov_net(x, w1, b1, w2, b2, w3, b3, *, alpha=ALPHA, tile_b=8192):
    """x: (B, input_size); weights stored as (in, out); biases as (out,)."""
    B, I = x.shape
    H = w1.shape[1]

    hp = jax.lax.Precision.HIGHEST
    f32 = jnp.float32

    # ---- batch-invariant phi(0): zeros @ W1 + b1 == b1 -> bias-only propagation ----
    h10 = jnp.tanh(b1.astype(f32))
    h20 = jnp.tanh(jnp.dot(h10, w2.astype(f32), precision=hp) + b2)
    phi0 = (jnp.dot(h20, w3.astype(f32), precision=hp) + b3)[0]
    b3_eff = b3.astype(f32) - phi0                       # fold phi(0) into last bias

    # ---- padded, transposed ("batch-on-lanes") layout ----
    Hsub = _rup(H, 8)            # 10 -> 16 sublanes
    Osub = 8                     # pad W3/b3 rows 1 -> 8 for the MXU (row 0 real)
    TB = _choose_tb(B, tile_b)
    Bp = _rup(B, TB)

    xt = jnp.pad(x.astype(f32).T, ((0, 0), (0, Bp - B)))                # (2, Bp)
    w1t = jnp.pad(w1.T.astype(f32), ((0, Hsub - H), (0, 0)))            # (16, 2)
    w2t = jnp.pad(w2.T.astype(f32), ((0, Hsub - H), (0, Hsub - H)))     # (16, 16)
    w3t = jnp.pad(w3.T.astype(f32), ((0, Osub - 1), (0, Hsub - H)))     # (8, 16)
    b1t = jnp.pad(b1.astype(f32).reshape(-1, 1), ((0, Hsub - H), (0, 0)))
    b2t = jnp.pad(b2.astype(f32).reshape(-1, 1), ((0, Hsub - H), (0, 0)))
    b3t = jnp.pad(b3_eff.reshape(-1, 1), ((0, Osub - 1), (0, 0)))

    # ---- global Frobenius norm from the padded transpose (zero pad is exact) ----
    anorm = (alpha * jnp.sqrt(jnp.sum(xt * xt))).reshape(1).astype(f32)  # (1,) -> SMEM

    def const(shape):            # weight/bias blocks: resident in VMEM across the grid
        return pl.BlockSpec(shape, lambda i: (0, 0))

    out = pl.pallas_call(
        _lyapunov_kernel,
        out_shape=jax.ShapeDtypeStruct((1, Bp), jnp.float32),
        grid=(Bp // TB,),
        in_specs=[
            pl.BlockSpec(memory_space=pltpu.MemorySpace.SMEM),          # [alpha*||x||]
            pl.BlockSpec((I, TB), lambda i: (0, i)),                    # x tile (2, TB)
            const((Hsub, I)), const((Hsub, 1)),                         # W1^T, b1
            const((Hsub, Hsub)), const((Hsub, 1)),                      # W2^T, b2
            const((Osub, Hsub)), const((Osub, 1)),                      # W3^T, b3 - phi0
        ],
        out_specs=pl.BlockSpec((1, TB), lambda i: (0, i)),
        compiler_params=pltpu.CompilerParams(
            dimension_semantics=("parallel",)),                         # 2 TCs on v7x
    )(anorm, xt, w1t, b1t, w2t, b2t, w3t, b3t)

    return out[0:1, :B].T        # (B, 1), matching the PyTorch module's output shape


def _init_params(key):
    """Deterministic init mirroring the module: xavier-uniform weights, bias 0.9.
    Weights returned as (in, out)."""
    k1, k2, k3 = jax.random.split(key, 3)

    def xavier(k, fan_in, fan_out):
        bound = jnp.sqrt(6.0 / (fan_in + fan_out))
        return jax.random.uniform(k, (fan_in, fan_out), jnp.float32, -bound, bound)

    w1 = xavier(k1, INPUT_SIZE, HIDDEN)
    w2 = xavier(k2, HIDDEN, HIDDEN)
    w3 = xavier(k3, HIDDEN, 1)
    b1 = jnp.full((HIDDEN,), 0.9, jnp.float32)
    b2 = jnp.full((HIDDEN,), 0.9, jnp.float32)
    b3 = jnp.full((1,), 0.9, jnp.float32)
    return w1, b1, w2, b2, w3, b3


def _reference(x, w1, b1, w2, b2, w3, b3, alpha=ALPHA):
    hp = jax.lax.Precision.HIGHEST

    def mlp(z):
        h1 = jnp.tanh(jnp.dot(z, w1, precision=hp) + b1)
        h2 = jnp.tanh(jnp.dot(h1, w2, precision=hp) + b2)
        return jnp.dot(h2, w3, precision=hp) + b3

    phi = mlp(x)
    phi0 = mlp(jnp.zeros_like(x))
    return jnp.square(phi - phi0) + alpha * jnp.linalg.norm(x)


if __name__ == "__main__":
    key = jax.random.PRNGKey(0)
    kx, kp = jax.random.split(key)
    params = _init_params(kp)

    # Small batch: single grid step (TB = 128, Bp = 128).
    x_small = jax.random.normal(kx, (4, INPUT_SIZE), jnp.float32)
    vx = jax.block_until_ready(lyapunov_net(x_small, *params))
    ref = _reference(x_small, *params)
    assert vx.shape == (4, 1)
    assert jnp.allclose(vx, ref, rtol=1e-4, atol=1e-5), (vx, ref)

    # Larger batch with default tile_b: TB is capped at ceil(Bp/2) -> 2 grid steps,
    # exercising the parallel batch grid, resident weights and batch padding.
    x_big = jax.random.normal(kx, (200, INPUT_SIZE), jnp.float32)
    vx_b = jax.block_until_ready(lyapunov_net(x_big, *params))
    ref_b = _reference(x_big, *params)
    assert vx_b.shape == (200, 1)
    assert jnp.allclose(vx_b, ref_b, rtol=1e-4, atol=1e-5), (vx_b, ref_b)

    print("KERNEL_OK")
</pallas_src>

<mosaic_0001>
module attributes {stable_mosaic.version = 11 : i64} {
  func.func @_lyapunov_kernel(%arg0: i32, %arg1: memref<1xf32, #tpu.memory_space<smem>>, %arg2: memref<2x128xf32, #tpu.memory_space<vmem>>, %arg3: memref<16x2xf32, #tpu.memory_space<vmem>>, %arg4: memref<16x1xf32, #tpu.memory_space<vmem>>, %arg5: memref<16x16xf32, #tpu.memory_space<vmem>>, %arg6: memref<16x1xf32, #tpu.memory_space<vmem>>, %arg7: memref<8x16xf32, #tpu.memory_space<vmem>>, %arg8: memref<8x1xf32, #tpu.memory_space<vmem>>, %arg9: memref<1x128xf32, #tpu.memory_space<vmem>>) attributes {dimension_semantics = [#tpu.dimension_semantics<parallel>], iteration_bounds = array<i64: 1>, scalar_prefetch = 0 : i64, scratch_operands = 0 : i64, tpu.core_type = #tpu.core_type<tc>, window_params = [{transform_indices = @transform_0, window_bounds = array<i64: 1>}, {transform_indices = @transform_1, window_bounds = array<i64: 2, 128>}, {pipeline_mode = #tpu.pipeline_mode<synchronous>, transform_indices = @transform_2, window_bounds = array<i64: 16, 2>}, {pipeline_mode = #tpu.pipeline_mode<synchronous>, transform_indices = @transform_3, window_bounds = array<i64: 16, 1>}, {pipeline_mode = #tpu.pipeline_mode<synchronous>, transform_indices = @transform_4, window_bounds = array<i64: 16, 16>}, {pipeline_mode = #tpu.pipeline_mode<synchronous>, transform_indices = @transform_5, window_bounds = array<i64: 16, 1>}, {pipeline_mode = #tpu.pipeline_mode<synchronous>, transform_indices = @transform_6, window_bounds = array<i64: 8, 16>}, {pipeline_mode = #tpu.pipeline_mode<synchronous>, transform_indices = @transform_7, window_bounds = array<i64: 8, 1>}, {transform_indices = @transform_8, window_bounds = array<i64: 1, 128>}]} {
    %c0 = arith.constant 0 : index
    %0 = memref.load %arg1[%c0] : memref<1xf32, #tpu.memory_space<smem>>
    %c0_0 = arith.constant 0 : index
    %c0_1 = arith.constant 0 : index
    %1 = vector.load %arg2[%c0_0, %c0_1] : memref<2x128xf32, #tpu.memory_space<vmem>>, vector<2x128xf32>
    %c0_2 = arith.constant 0 : index
    %c0_3 = arith.constant 0 : index
    %2 = vector.load %arg3[%c0_2, %c0_3] : memref<16x2xf32, #tpu.memory_space<vmem>>, vector<16x2xf32>
    %cst = arith.constant dense<0.000000e+00> : vector<16x128xf32>
    %3 = tpu.matmul %2, %1, %cst {dimension_numbers = #tpu.dot_dimension_numbers<[1], [0], [0], [1], [0, 0, 1, 1], [], []>, precision = #tpu.contract_precision<fp32>} : vector<16x2xf32>, vector<2x128xf32>, vector<16x128xf32> -> vector<16x128xf32>
    %c0_4 = arith.constant 0 : index
    %c0_5 = arith.constant 0 : index
    %4 = vector.load %arg4[%c0_4, %c0_5] : memref<16x1xf32, #tpu.memory_space<vmem>>, vector<16x1xf32>
    %5 = vector.broadcast %4 : vector<16x1xf32> to vector<16x128xf32>
    %6 = arith.addf %3, %5 : vector<16x128xf32>
    %7 = math.tanh %6 : vector<16x128xf32>
    %c0_6 = arith.constant 0 : index
    %c0_7 = arith.constant 0 : index
    %8 = vector.load %arg5[%c0_6, %c0_7] : memref<16x16xf32, #tpu.memory_space<vmem>>, vector<16x16xf32>
    %cst_8 = arith.constant dense<0.000000e+00> : vector<16x128xf32>
    %9 = tpu.matmul %8, %7, %cst_8 {dimension_numbers = #tpu.dot_dimension_numbers<[1], [0], [0], [1], [0, 0, 1, 1], [], []>, precision = #tpu.contract_precision<fp32>} : vector<16x16xf32>, vector<16x128xf32>, vector<16x128xf32> -> vector<16x128xf32>
    %c0_9 = arith.constant 0 : index
    %c0_10 = arith.constant 0 : index
    %10 = vector.load %arg6[%c0_9, %c0_10] : memref<16x1xf32, #tpu.memory_space<vmem>>, vector<16x1xf32>
    %11 = vector.broadcast %10 : vector<16x1xf32> to vector<16x128xf32>
    %12 = arith.addf %9, %11 : vector<16x128xf32>
    %13 = math.tanh %12 : vector<16x128xf32>
    %c0_11 = arith.constant 0 : index
    %c0_12 = arith.constant 0 : index
    %14 = vector.load %arg7[%c0_11, %c0_12] : memref<8x16xf32, #tpu.memory_space<vmem>>, vector<8x16xf32>
    %cst_13 = arith.constant dense<0.000000e+00> : vector<8x128xf32>
    %15 = tpu.matmul %14, %13, %cst_13 {dimension_numbers = #tpu.dot_dimension_numbers<[1], [0], [0], [1], [0, 0, 1, 1], [], []>, precision = #tpu.contract_precision<fp32>} : vector<8x16xf32>, vector<16x128xf32>, vector<8x128xf32> -> vector<8x128xf32>
    %c0_14 = arith.constant 0 : index
    %c0_15 = arith.constant 0 : index
    %16 = vector.load %arg8[%c0_14, %c0_15] : memref<8x1xf32, #tpu.memory_space<vmem>>, vector<8x1xf32>
    %17 = vector.broadcast %16 : vector<8x1xf32> to vector<8x128xf32>
    %18 = arith.addf %15, %17 : vector<8x128xf32>
    %19 = vector.extract_strided_slice %18 {offsets = [0, 0], sizes = [1, 128], strides = [1, 1]} : vector<8x128xf32> to vector<1x128xf32>
    %20 = arith.mulf %19, %19 : vector<1x128xf32>
    %21 = vector.broadcast %0 : f32 to vector<1x128xf32>
    %22 = arith.addf %20, %21 : vector<1x128xf32>
    %c0_16 = arith.constant 0 : index
    %c0_17 = arith.constant 0 : index
    %23 = vector.load %arg9[%c0_16, %c0_17] : memref<1x128xf32, #tpu.memory_space<vmem>>, vector<1x128xf32>
    tpu.vector_store %arg9[%c0_16, %c0_17], %22 {strides = array<i32>} : memref<1x128xf32, #tpu.memory_space<vmem>>, vector<1x128xf32>,
    return
  }
  func.func @transform_0(%arg0: i32) -> i32 {
    %c0_i32 = arith.constant 0 : i32
    %c0_i32_0 = arith.constant 0 : i32
    return %c0_i32 : i32
  }
  func.func @transform_1(%arg0: i32) -> (i32, i32) {
    %c0_i32 = arith.constant 0 : i32
    %c0_i32_0 = arith.constant 0 : i32
    return %c0_i32, %arg0 : i32, i32
  }
  func.func @transform_2(%arg0: i32) -> (i32, i32) {
    %c0_i32 = arith.constant 0 : i32
    %c0_i32_0 = arith.constant 0 : i32
    %c0_i32_1 = arith.constant 0 : i32
    return %c0_i32, %c0_i32_0 : i32, i32
  }
  func.func @transform_3(%arg0: i32) -> (i32, i32) {
    %c0_i32 = arith.constant 0 : i32
    %c0_i32_0 = arith.constant 0 : i32
    %c0_i32_1 = arith.constant 0 : i32
    return %c0_i32, %c0_i32_0 : i32, i32
  }
  func.func @transform_4(%arg0: i32) -> (i32, i32) {
    %c0_i32 = arith.constant 0 : i32
    %c0_i32_0 = arith.constant 0 : i32
    %c0_i32_1 = arith.constant 0 : i32
    return %c0_i32, %c0_i32_0 : i32, i32
  }
  func.func @transform_5(%arg0: i32) -> (i32, i32) {
    %c0_i32 = arith.constant 0 : i32
    %c0_i32_0 = arith.constant 0 : i32
    %c0_i32_1 = arith.constant 0 : i32
    return %c0_i32, %c0_i32_0 : i32, i32
  }
  func.func @transform_6(%arg0: i32) -> (i32, i32) {
    %c0_i32 = arith.constant 0 : i32
    %c0_i32_0 = arith.constant 0 : i32
    %c0_i32_1 = arith.constant 0 : i32
    return %c0_i32, %c0_i32_0 : i32, i32
  }
  func.func @transform_7(%arg0: i32) -> (i32, i32) {
    %c0_i32 = arith.constant 0 : i32
    %c0_i32_0 = arith.constant 0 : i32
    %c0_i32_1 = arith.constant 0 : i32
    return %c0_i32, %c0_i32_0 : i32, i32
  }
  func.func @transform_8(%arg0: i32) -> (i32, i32) {
    %c0_i32 = arith.constant 0 : i32
    %c0_i32_0 = arith.constant 0 : i32
    return %c0_i32, %arg0 : i32, i32
  }
}

</mosaic_0001>

<bundles_post_ra>
// kernel: lyapunov_net.1
= control target key start
LH: loop header
LB: loop body
LE: loop exit
PB: predicated region body
PF: predicated region fallthrough
CT: control target
= control target key end

     0   :  { %vm53_vm0 = vcmask 1041408   ;;  %vm46_vm1 = vcmask 15360   ;;  %v638_v2 = vmov 0   ;;  %vm250_vm2 = vcmask 130048   ;;  %s726_s1 = inlined_call_operand.vmem [shape: f32[2,128], index: 1, kind: input, shape index: {}]   ;;  %s727_s2 = inlined_call_operand.vmem [shape: f32[16,2], index: 2, kind: input, shape index: {}]   ;;  %s728_s3 = inlined_call_operand.vmem [shape: f32[16,1], index: 3, kind: input, shape index: {}]   ;;  %s729_s4 = inlined_call_operand.vmem [shape: f32[16,16], index: 4, kind: input, shape index: {}]   ;;  %s730_s5 = inlined_call_operand.vmem [shape: f32[16,1], index: 5, kind: input, shape index: {}]   ;;  %s731_s6 = inlined_call_operand.vmem [shape: f32[8,16], index: 6, kind: input, shape index: {}]   ;;  %s732_s7 = inlined_call_operand.vmem [shape: f32[8,1], index: 7, kind: input, shape index: {}]   ;;  %s733_s0 = inlined_call_operand.<no memory space> [shape: f32[1], index: 0, kind: input, shape index: {}]   ;;  %s734_s8 = inlined_call_operand.vmem [shape: f32[1,128], index: 8, kind: output, shape index: {}]  }
   0x1   :  { %v31_v0 = vld [vmem:[%s726_s1] sm:$0x3]  ;;  %627 = vset.pattern.permute.xlu0 %v638_v2  ;;  %v35_v3 = vld [vmem:[%s728_s3 + $0x8] sm:$0xff]  ;;  %628 = vset.pattern.permute.xlu1 %v638_v2 }
   0x2   :  { %v32_v1 = vld [vmem:[%s727_s2] sm:$0xff]  ;;  %v55_v4 = vsel %vm53_vm0, %v31_v0, 0  ;;  %43 = vperm.xlu0 %627, %v35_v3   ;;  %v33_v6 = vld [vmem:[%s727_s2 + $0x8] sm:$0xff]  ;;  %629 = vset.pattern.permute.xlu2 %v638_v2 }
   0x3   :  { %v48_v5 = vsel %vm46_vm1, %v32_v1, 0  ;;  %v72_v7 = vand.u32 4294901760, %v55_v4  ;;  %v51_v9 = vsel %vm46_vm1, %v33_v6, 0  ;;  %v34_v16 = vld [vmem:[%s728_s3] sm:$0xff]  ;;  %v239_v47 = vld [vmem:[%s730_s5 + $0x8] sm:$0xff] }
   0x4   :  { %v74_v8 = vand.u32 4294901760, %v48_v5  ;;  %v82_v10 = vand.u32 4294901760, %v51_v9  ;;  %v236_v38 = vld [vmem:[%s729_s4] sm:$0xff]  ;;  %247 = vperm.xlu1 %628, %v239_v47   ;;  %v237_v50 = vld [vmem:[%s729_s4 + $0x8] sm:$0xff] }
   0x5   :  { %v107_v11 = vsub.f32 %v55_v4, %v72_v7  ;;  %73 = vmatpush.msra.mxu0 %v72_v7  ;;  %166 = vmatpush.msra.mxu3 %v72_v7  ;;  %v252_v43 = vsel %vm250_vm2, %v236_v38, 0  ;;  %v255_v55 = vsel %vm250_vm2, %v237_v50, 0  ;;  %v238_v56 = vld [vmem:[%s730_s5] sm:$0xff] }
   0x6   :  { %v75_v12 = vsub.f32 %v48_v5, %v74_v8  ;;  %v83_v13 = vsub.f32 %v51_v9, %v82_v10  ;;  %v275_v48 = vand.u32 4294901760, %v252_v43  ;;  %v283_v60 = vand.u32 4294901760, %v255_v55 }
   0x7   :  { %138 = vmatpush.msra.mxu2 %v107_v11  ;;  %v108_v15 = vand.u32 4294901760, %v107_v11 }
   0x8   :  { %v76_v14 = vand.u32 4294901760, %v75_v12  ;;  %141 = vmatmul.f32.vlgmr.msra.gmra.mxu2 %v75_v12  ;;  %v84_v19 = vand.u32 4294901760, %v83_v13  ;;  %v276_v54 = vsub.f32 %v252_v43, %v275_v48  ;;  %v284_v63 = vsub.f32 %v255_v55, %v283_v60  ;;  %v450_v43 = vld [vmem:[%s732_s7] sm:$0xff] }
   0x9   :  { %v109_v18 = vsub.f32 %v107_v11, %v108_v15  ;;  %198 = vmatpush.msrb.mxu0 %v108_v15  ;;  %453 = vperm.xlu2 %629, %v450_v43  }
   0xa   :  { %v77_v17 = vsub.f32 %v75_v12, %v76_v14  ;;  %170 = vmatmul.f32.vlgmr.msra.gmra.mxu3 %v76_v14  ;;  %38 = vperm.xlu0 %627, %v34_v16   ;;  %v85_v22 = vsub.f32 %v83_v13, %v84_v19  ;;  %v277_v59 = vand.u32 4294901760, %v276_v54  ;;  %v285_v4 = vand.u32 4294901760, %v284_v63 }
   0xb   :  { %v110_v21 = vand.u32 4294901760, %v109_v18 }
   0xc   :  { %v78_v20 = vand.u32 4294901760, %v77_v17  ;;  %v86_v23 = vand.u32 4294901760, %v85_v22  ;;  %242 = vperm.xlu1 %628, %v238_v56   ;;  %v278_v62 = vsub.f32 %v276_v54, %v277_v59 }
   0xd   :  { %111 = vmatpush.msra.mxu1 %v110_v21 }
   0xe   :  { %79 = vmatmul.f32.vlgmr.msra.gmra.mxu0 %v78_v20  ;;  %113 = vmatmul.f32.vlgmr.msra.gmra.mxu1 %v74_v8  ;;  %v279_v3 = vand.u32 4294901760, %v278_v62 }
   0xf   :  { %224 = vmatpush.msrb.mxu1 %v72_v7 }
  0x10   :  { %146 = vmatmul.f32.gmra.mxu2 %v83_v13 }
  0x12   :  { %176 = vmatmul.f32.gmra.mxu3 %v84_v19 }
  0x16   :  { %87 = vmatmul.f32.gmra.mxu0 %v86_v23  ;;  %117 = vmatmul.f32.gmra.mxu1 %v82_v10 }
  0x1e   :  { %200 = vmatmul.f32.vlgmr.msrb.gmra.mxu0 %v74_v8  ;;  %226 = vmatmul.f32.vlgmr.msrb.gmra.mxu1 %v74_v8  ;;  %v286_v8 = vsub.f32 %v284_v63, %v285_v4 }
  0x20   :  { %v287_v12 = vand.u32 4294901760, %v286_v8 }
  0x26   :  { %204 = vmatmul.f32.gmra.mxu0 %v82_v10  ;;  %230 = vmatmul.f32.gmra.mxu1 %v82_v10 }
  0x74   :  { %v44_v24 = vpop.permute.xlu0 %43 }
  0x76   :  { %v248_v14 = vpop.permute.xlu1 %247 }
  0x7c   :  { %v39_v25 = vpop.permute.xlu0 %38 }
  0x7e   :  { %v243_v16 = vpop.permute.xlu1 %242 }
  0x8b   :  { %v80_v26 = vpop.f32.mrf.mxu0  ;;  %v114_v27 = vpop.f32.mrf.mxu1 }
  0x8c   :  { %v81_v28 = vadd.f32 %v80_v26, %v39_v25  ;;  %v142_v29 = vpop.f32.mrf.mxu2 }
  0x8d   :  { %v171_v33 = vpop.f32.mrf.mxu3 }
  0x8e   :  { %v115_v30 = vadd.f32 %v114_v27, %v81_v28 }
  0x90   :  { %v143_v34 = vadd.f32 %v142_v29, %v115_v30  ;;  %v449_v29 = vld [vmem:[%s731_s6] sm:$0xff] }
  0x92   :  { %v172_v36 = vadd.f32 %v171_v33, %v143_v34  ;;  %v457_v33 = vsel %vm250_vm2, %v449_v29, 0 }
  0x93   :  { %v88_v31 = vpop.f32.mrf.mxu0  ;;  %v118_v32 = vpop.f32.mrf.mxu1 }
  0x94   :  { %v89_v35 = vadd.f32 %v88_v31, %v44_v24  ;;  %v147_v39 = vpop.f32.mrf.mxu2 }
  0x95   :  { %v177_v46 = vpop.f32.mrf.mxu3 }
  0x96   :  { %v119_v37 = vadd.f32 %v118_v32, %v89_v35 }
  0x98   :  { %v148_v44 = vadd.f32 %v147_v39, %v119_v37  ;;  %v477_v37 = vand.u32 4294901760, %v457_v33 }
  0x9a   :  { %v178_v49 = vadd.f32 %v177_v46, %v148_v44 }
  0x9b   :  { %v201_v40 = vpop.f32.mrf.mxu0  ;;  %v227_v42 = vpop.f32.mrf.mxu1 }
  0x9c   :  { %v202_v41 = vadd.f32 %v201_v40, %v172_v36 }
  0x9e   :  { %v228_v45 = vadd.f32 %v227_v42, %v202_v41  ;;  %v478_v41 = vsub.f32 %v457_v33, %v477_v37 }
  0xa0   :  { %630 = vtanh.f32 %v228_v45  ;;  %v479_v46 = vand.u32 4294901760, %v478_v41 }
  0xa3   :  { %v205_v51 = vpop.f32.mrf.mxu0  ;;  %v231_v53 = vpop.f32.mrf.mxu1 }
  0xa4   :  { %v206_v52 = vadd.f32 %v205_v51, %v178_v49 }
  0xa6   :  { %v631_v57 = vpop.eup %630  ;;  %v232_v58 = vadd.f32 %v231_v53, %v206_v52 }
  0xa7   :  { %v273_v61 = vand.u32 4294901760, %v631_v57 }
  0xa8   :  { %632 = vtanh.f32 %v232_v58 }
  0xa9   :  { %v313_v0 = vsub.f32 %v631_v57, %v273_v61 }
  0xab   :  { %v314_v6 = vand.u32 4294901760, %v313_v0 }
  0xad   :  { %v315_v10 = vsub.f32 %v313_v0, %v314_v6 }
  0xae   :  { %v633_v1 = vpop.eup %632 }
  0xaf   :  { %v271_v2 = vand.u32 4294901760, %v633_v1  ;;  %v316_v13 = vand.u32 4294901760, %v315_v10 }
  0xb1   :  { %272 = vmatpush.msrb.mxu2 %v271_v2  ;;  %373 = vmatpush.msra.mxu1 %v271_v2  ;;  %v307_v5 = vsub.f32 %v633_v1, %v271_v2 }
  0xb3   :  { %274 = vmatpush.msrb.mxu2 %v273_v61  ;;  %343 = vmatpush.msra.mxu0 %v307_v5  ;;  %v308_v7 = vand.u32 4294901760, %v307_v5 }
  0xb4   :  { %375 = vmatpush.msra.mxu1 %v273_v61  ;;  %280 = vmatmul.f32.vlgmr.msrb.gmra.mxu2 %v279_v3 }
  0xb5   :  { %346 = vmatpush.msra.mxu0 %v313_v0  ;;  %406 = vmatpush.msra.mxu2 %v308_v7  ;;  %v309_v9 = vsub.f32 %v307_v5, %v308_v7 }
  0xb6   :  { %349 = vmatmul.f32.vlgmr.msra.gmra.mxu0 %v276_v54  ;;  %379 = vmatmul.f32.vlgmr.msra.gmra.mxu1 %v277_v59 }
  0xb7   :  { %410 = vmatpush.msra.mxu2 %v314_v6  ;;  %v310_v11 = vand.u32 4294901760, %v309_v9  ;;  %v619_v9 = vstv %s733_s0 }
  0xb9   :  { %311 = vmatpush.msrb.mxu3 %v310_v11 }
  0xbb   :  { %317 = vmatpush.msrb.mxu3 %v316_v13 }
  0xbc   :  { %288 = vmatmul.f32.gmra.mxu2 %v287_v12  ;;  %319 = vmatmul.f32.vlgmr.msrb.gmra.mxu3 %v275_v48 }
  0xbd   :  { %435 = vmatpush.msra.mxu3 %v271_v2 }
  0xbe   :  { %354 = vmatmul.f32.gmra.mxu0 %v284_v63  ;;  %385 = vmatmul.f32.gmra.mxu1 %v285_v4 }
  0xbf   :  { %437 = vmatpush.msra.mxu3 %v273_v61 }
  0xc4   :  { %323 = vmatmul.f32.gmra.mxu3 %v283_v60  ;;  %412 = vmatmul.f32.vlgmr.msra.gmra.mxu2 %v275_v48 }
  0xcc   :  { %416 = vmatmul.f32.gmra.mxu2 %v283_v60  ;;  %439 = vmatmul.f32.vlgmr.msra.gmra.mxu3 %v275_v48  ;;  %v480_v48 = vsub.f32 %v478_v41, %v479_v46 }
  0xce   :  { %v481_v52 = vand.u32 4294901760, %v480_v48 }
  0xd4   :  { %443 = vmatmul.f32.gmra.mxu3 %v283_v60  ;;  %v454_v60 = vpop.permute.xlu2 %453 }
 0x133   :  { %v350_v20 = vpop.f32.mrf.mxu0  ;;  %v380_v22 = vpop.f32.mrf.mxu1 }
 0x137   :  { %v281_v15 = vpop.f32.mrf.mxu2 }
 0x138   :  { %v282_v19 = vadd.f32 %v281_v15, %v243_v16 }
 0x13b   :  { %v355_v30 = vpop.f32.mrf.mxu0  ;;  %v386_v36 = vpop.f32.mrf.mxu1 }
 0x13f   :  { %v289_v17 = vpop.f32.mrf.mxu2  ;;  %v320_v18 = vpop.f32.mrf.mxu3 }
 0x140   :  { %v321_v21 = vadd.f32 %v320_v18, %v282_v19  ;;  %v290_v24 = vadd.f32 %v289_v17, %v248_v14 }
 0x142   :  { %v351_v25 = vadd.f32 %v350_v20, %v321_v21 }
 0x144   :  { %v381_v27 = vadd.f32 %v380_v22, %v351_v25 }
 0x147   :  { %v324_v23 = vpop.f32.mrf.mxu3  ;;  %v413_v26 = vpop.f32.mrf.mxu2 }
 0x148   :  { %v325_v28 = vadd.f32 %v324_v23, %v290_v24  ;;  %v414_v31 = vadd.f32 %v413_v26, %v381_v27 }
 0x14a   :  { %v356_v34 = vadd.f32 %v355_v30, %v325_v28 }
 0x14c   :  { %v387_v39 = vadd.f32 %v386_v36, %v356_v34 }
 0x14f   :  { %v440_v32 = vpop.f32.mrf.mxu3  ;;  %v417_v38 = vpop.f32.mrf.mxu2 }
 0x150   :  { %v441_v35 = vadd.f32 %v440_v32, %v414_v31  ;;  %v418_v40 = vadd.f32 %v417_v38, %v387_v39 }
 0x152   :  { %634 = vtanh.f32 %v441_v35 }
 0x157   :  { %v444_v42 = vpop.f32.mrf.mxu3 }
 0x158   :  { %v635_v44 = vpop.eup %634  ;;  %v445_v45 = vadd.f32 %v444_v42, %v418_v40 }
 0x159   :  { %v475_v47 = vand.u32 4294901760, %v635_v44 }
 0x15a   :  { %636 = vtanh.f32 %v445_v45 }
 0x15b   :  { %v507_v49 = vsub.f32 %v635_v44, %v475_v47 }
 0x15d   :  { %v508_v54 = vand.u32 4294901760, %v507_v49 }
 0x15f   :  { %v509_v57 = vsub.f32 %v507_v49, %v508_v54 }
 0x160   :  { %v637_v50 = vpop.eup %636 }
 0x161   :  { %v473_v51 = vand.u32 4294901760, %v637_v50  ;;  %v510_v59 = vand.u32 4294901760, %v509_v57 }
 0x163   :  { %474 = vmatpush.msrb.mxu0 %v473_v51  ;;  %558 = vmatpush.msrb.mxu3 %v473_v51  ;;  %v501_v53 = vsub.f32 %v637_v50, %v473_v51 }
 0x165   :  { %476 = vmatpush.msrb.mxu0 %v475_v47  ;;  %533 = vmatpush.msrb.mxu2 %v501_v53  ;;  %v502_v55 = vand.u32 4294901760, %v501_v53 }
 0x166   :  { %560 = vmatpush.msrb.mxu3 %v475_v47  ;;  %482 = vmatmul.f32.vlgmr.msrb.gmra.mxu0 %v481_v52 }
 0x167   :  { %536 = vmatpush.msrb.mxu2 %v507_v49  ;;  %585 = vmatpush.msra.mxu0 %v502_v55  ;;  %v503_v56 = vsub.f32 %v501_v53, %v502_v55 }
 0x168   :  { %539 = vmatmul.f32.vlgmr.msrb.gmra.mxu2 %v478_v41  ;;  %564 = vmatmul.f32.vlgmr.msrb.gmra.mxu3 %v479_v46 }
 0x169   :  { %589 = vmatpush.msra.mxu0 %v508_v54  ;;  %v504_v58 = vand.u32 4294901760, %v503_v56 }
 0x16b   :  { %505 = vmatpush.msrb.mxu1 %v504_v58 }
 0x16d   :  { %511 = vmatpush.msrb.mxu1 %v510_v59 }
 0x16e   :  { %591 = vmatmul.f32.vlgmr.msra.gmra.mxu0 %v477_v37  ;;  %513 = vmatmul.f32.vlgmr.msrb.gmra.mxu1 %v477_v37 }
 0x16f   :  { %610 = vmatpush.msra.mxu1 %v473_v51 }
 0x171   :  { %612 = vmatpush.msra.mxu1 %v475_v47 }
 0x176   :  { %614 = vmatmul.f32.vlgmr.msra.gmra.mxu1 %v477_v37 }
 0x1e3   :  { %v483_v61 = vpop.f32.mrf.mxu0 }
 0x1e4   :  { %v484_v62 = vadd.f32 %v483_v61, %v454_v60 }
 0x1eb   :  { %v514_v63 = vpop.f32.mrf.mxu1  ;;  %v540_v0 = vpop.f32.mrf.mxu2 }
 0x1ec   :  { %v515_v1 = vadd.f32 %v514_v63, %v484_v62  ;;  %v565_v2 = vpop.f32.mrf.mxu3  ;;  %v592_v4 = vpop.f32.mrf.mxu0 }
 0x1ee   :  { %v541_v3 = vadd.f32 %v540_v0, %v515_v1 }
 0x1f0   :  { %v566_v5 = vadd.f32 %v565_v2, %v541_v3 }
 0x1f2   :  { %v593_v6 = vadd.f32 %v592_v4, %v566_v5 }
 0x1f3   :  { %v615_v7 = vpop.f32.mrf.mxu1 }
 0x1f4   :  { %v616_v8 = vadd.f32 %v615_v7, %v593_v6 }
 0x1f6   :  { %v618_v10 = vmul.f32 %v616_v8, %v616_v8 }
 0x1f8   :  { %v620_v11 = vadd.f32 %v619_v9, %v618_v10 }
 0x1fa   :  { %621 = vst [vmem:[%s734_s8] sm:$0x1] %v620_v11 }

</bundles_post_ra>
